<compile_context>
chip_gen: v7x
topology: tpu7x:2x2x1
jax: 0.10.0
libtpu: 0.0.40
codegen_flags: <defaults>
</compile_context>

<pallas_src>
import jax
import jax.numpy as jnp
from jax.experimental import pallas as pl
from jax.experimental.pallas import tpu as pltpu

FILTER_SIZES = (3, 4, 5)
FILTER_NUM = 64
LANE = 128


def textcnn_kernel(x_ref,
                   w3_ref, b3_ref,
                   w4_ref, b4_ref,
                   w5_ref, b5_ref,
                   fcw_ref, fcb_ref,
                   out_ref):
    x = x_ref[...]                                    # (TB, L, D) bf16
    TB, L, D = x.shape
    F = FILTER_NUM

    logits = jnp.zeros(out_ref.shape, jnp.float32)    # (TB, C_pad) f32

    for bank, (k, w_ref, b_ref) in enumerate(((3, w3_ref, b3_ref),
                                              (4, w4_ref, b4_ref),
                                              (5, w5_ref, b5_ref))):
        lout = L - k + 1
        # im2col: merge the k shifted (D -> F) contractions into one K = k*D matmul.
        win = jnp.concatenate([x[:, s:s + lout, :] for s in range(k)],
                              axis=-1)                              # (TB, lout, k*D) bf16
        conv = jnp.einsum('blk,kf->blf', win, w_ref[...],
                          preferred_element_type=jnp.float32)       # (TB, lout, F) f32
        conv = jnp.maximum(conv + b_ref[...].reshape(1, 1, F), 0.0)  # bias + ReLU (f32)
        # avg_pool1d over the full length: sum here, the 1/lout scale is folded
        # into the fc weight on the host side.
        pooled = jnp.sum(conv, axis=1)                               # (TB, F) f32
        # TODO(synk): nn.Dropout(0.5) treated as inference-mode identity.
        # (The post-dropout ReLU of the reference is a provable no-op: pooled >= 0.)
        logits = logits + jnp.dot(pooled,
                                  fcw_ref[bank * F:(bank + 1) * F, :],
                                  preferred_element_type=jnp.float32)

    out_ref[...] = logits + fcb_ref[...]


def textcnn_forward(x, params):
    B, L, D = x.shape
    C = params['fc_b'].shape[-1]
    c_pad = ((C + LANE - 1) // LANE) * LANE

    # Batch tile: full batch when small, otherwise sublane-aligned tiles of 8
    # (second-to-last out-block dim must be a multiple of 8 or the full extent).
    tb = B if B <= 8 else 8
    grid = (pl.cdiv(B, tb),)

    # bf16 matmul operands (DMA moves bf16); biases and fc stay f32.
    x_bf = x.astype(jnp.bfloat16)
    conv_w = {k: params[f'w{k}'].astype(jnp.bfloat16) for k in FILTER_SIZES}

    # Fold the 1/lout mean-pool scale into the fc weight; pad C up to a 128-lane block.
    scale = jnp.concatenate(
        [jnp.full((FILTER_NUM, 1), 1.0 / (L - k + 1), jnp.float32)
         for k in FILTER_SIZES], axis=0)                             # (3F, 1)
    fcw = jnp.pad(params['fc_w'] * scale, ((0, 0), (0, c_pad - C)))  # (3F, c_pad) f32
    fcb = jnp.pad(params['fc_b'], ((0, 0), (0, c_pad - C)))          # (1, c_pad) f32

    args = (x_bf,
            conv_w[3], params['b3'],
            conv_w[4], params['b4'],
            conv_w[5], params['b5'],
            fcw, fcb)

    def full_spec(a):
        nd = a.ndim
        return pl.BlockSpec(a.shape, lambda b, nd=nd: (0,) * nd)

    in_specs = ([pl.BlockSpec((tb, L, D), lambda b: (b, 0, 0))]
                + [full_spec(a) for a in args[1:]])

    out = pl.pallas_call(
        textcnn_kernel,
        out_shape=jax.ShapeDtypeStruct((B, c_pad), jnp.float32),
        grid=grid,
        in_specs=in_specs,
        out_specs=pl.BlockSpec((tb, c_pad), lambda b: (b, 0)),
        compiler_params=pltpu.CompilerParams(
            dimension_semantics=("parallel",),        # megacore sharding on v7x
            vmem_limit_bytes=32 * 1024 * 1024),       # safe on v5e / v6e / v7x
    )(*args)
    return out[:, :C]


def textcnn_reference(x, params):
    """Pure-JAX f32 reference matching the PyTorch TextCNN forward (dropout=identity)."""
    B, L, D = x.shape
    feats = []
    for k in FILTER_SIZES:
        lout = L - k + 1
        w = params[f'w{k}']                                   # (k*D, F)
        acc = jnp.zeros((B, lout, FILTER_NUM), jnp.float32)
        for s in range(k):
            acc = acc + jnp.einsum('bld,df->blf',
                                   x[:, s:s + lout, :], w[s * D:(s + 1) * D, :])
        acc = jax.nn.relu(acc + params[f'b{k}'].reshape(1, 1, -1))
        feats.append(jnp.mean(acc, axis=1))
    feat = jax.nn.relu(jnp.concatenate(feats, axis=1))
    return feat @ params['fc_w'] + params['fc_b']


def make_params(key, input_dim, class_num):
    """Deterministic synthetic parameters matching the PyTorch module shapes."""
    keys = jax.random.split(key, 2 * len(FILTER_SIZES) + 2)
    params = {}
    for i, k in enumerate(FILTER_SIZES):
        # nn.Conv2d(1, 64, (k, D)) -> weight (64, 1, k, D), bias (64,)
        w = jax.random.normal(keys[2 * i], (FILTER_NUM, 1, k, input_dim),
                              jnp.float32) * 0.05
        b = jax.random.normal(keys[2 * i + 1], (FILTER_NUM,), jnp.float32) * 0.05
        # Flatten to (k*D, F) so the kernel does x_window @ w + b.
        params[f'w{k}'] = jnp.transpose(w.reshape(FILTER_NUM, k * input_dim))
        params[f'b{k}'] = b.reshape(1, FILTER_NUM)
    # nn.Linear(3*64, class_num) -> weight (C, 192), bias (C,)
    fc_w = jax.random.normal(keys[-2], (class_num, len(FILTER_SIZES) * FILTER_NUM),
                             jnp.float32) * 0.05
    fc_b = jax.random.normal(keys[-1], (class_num,), jnp.float32) * 0.05
    params['fc_w'] = jnp.transpose(fc_w)              # (192, C)
    params['fc_b'] = fc_b.reshape(1, class_num)
    return params


if __name__ == "__main__":
    key = jax.random.PRNGKey(0)
    k_x, k_p = jax.random.split(key)

    B, L, D, C = 2, 16, 32, 8                         # batch, seq, input_dim, output_size
    x = jax.random.normal(k_x, (B, L, D), jnp.float32)
    params = make_params(k_p, input_dim=D, class_num=C)

    logits = textcnn_forward(x, params)
    jax.block_until_ready(logits)
    assert logits.shape == (B, C) and logits.dtype == jnp.float32

    ref = textcnn_reference(x, params)
    assert bool(jnp.allclose(logits, ref, rtol=5e-2, atol=5e-2)), "mismatch vs reference"

    print("KERNEL_OK")
</pallas_src>

<mosaic_0001>
module attributes {stable_mosaic.version = 11 : i64} {
  func.func @textcnn_kernel(%arg0: i32, %arg1: memref<2x16x32xbf16, #tpu.memory_space<vmem>>, %arg2: memref<96x64xbf16, #tpu.memory_space<vmem>>, %arg3: memref<1x64xf32, #tpu.memory_space<vmem>>, %arg4: memref<128x64xbf16, #tpu.memory_space<vmem>>, %arg5: memref<1x64xf32, #tpu.memory_space<vmem>>, %arg6: memref<160x64xbf16, #tpu.memory_space<vmem>>, %arg7: memref<1x64xf32, #tpu.memory_space<vmem>>, %arg8: memref<192x128xf32, #tpu.memory_space<vmem>>, %arg9: memref<1x128xf32, #tpu.memory_space<vmem>>, %arg10: memref<2x128xf32, #tpu.memory_space<vmem>>) attributes {dimension_semantics = [#tpu.dimension_semantics<parallel>], iteration_bounds = array<i64: 1>, scalar_prefetch = 0 : i64, scratch_operands = 0 : i64, tpu.core_type = #tpu.core_type<tc>, window_params = [{transform_indices = @transform_0, window_bounds = array<i64: 2, 16, 32>}, {pipeline_mode = #tpu.pipeline_mode<synchronous>, transform_indices = @transform_1, window_bounds = array<i64: 96, 64>}, {pipeline_mode = #tpu.pipeline_mode<synchronous>, transform_indices = @transform_2, window_bounds = array<i64: 1, 64>}, {pipeline_mode = #tpu.pipeline_mode<synchronous>, transform_indices = @transform_3, window_bounds = array<i64: 128, 64>}, {pipeline_mode = #tpu.pipeline_mode<synchronous>, transform_indices = @transform_4, window_bounds = array<i64: 1, 64>}, {pipeline_mode = #tpu.pipeline_mode<synchronous>, transform_indices = @transform_5, window_bounds = array<i64: 160, 64>}, {pipeline_mode = #tpu.pipeline_mode<synchronous>, transform_indices = @transform_6, window_bounds = array<i64: 1, 64>}, {pipeline_mode = #tpu.pipeline_mode<synchronous>, transform_indices = @transform_7, window_bounds = array<i64: 192, 128>}, {pipeline_mode = #tpu.pipeline_mode<synchronous>, transform_indices = @transform_8, window_bounds = array<i64: 1, 128>}, {transform_indices = @transform_9, window_bounds = array<i64: 2, 128>}]} {
    %c0 = arith.constant 0 : index
    %c0_0 = arith.constant 0 : index
    %c0_1 = arith.constant 0 : index
    %0 = vector.load %arg1[%c0, %c0_0, %c0_1] : memref<2x16x32xbf16, #tpu.memory_space<vmem>>, vector<2x16x32xbf16>
    %cst = arith.constant 0.000000e+00 : f32
    %1 = vector.broadcast %cst : f32 to vector<2x128xf32>
    %2 = vector.extract_strided_slice %0 {offsets = [0, 0, 0], sizes = [2, 14, 32], strides = [1, 1, 1]} : vector<2x16x32xbf16> to vector<2x14x32xbf16>
    %3 = vector.extract_strided_slice %0 {offsets = [0, 1, 0], sizes = [2, 14, 32], strides = [1, 1, 1]} : vector<2x16x32xbf16> to vector<2x14x32xbf16>
    %4 = vector.extract_strided_slice %0 {offsets = [0, 2, 0], sizes = [2, 14, 32], strides = [1, 1, 1]} : vector<2x16x32xbf16> to vector<2x14x32xbf16>
    %5 = tpu.concatenate %2, %3, %4 in 2 : vector<2x14x32xbf16>, vector<2x14x32xbf16>, vector<2x14x32xbf16> -> vector<2x14x96xbf16>
    %c0_2 = arith.constant 0 : index
    %c0_3 = arith.constant 0 : index
    %6 = vector.load %arg2[%c0_2, %c0_3] : memref<96x64xbf16, #tpu.memory_space<vmem>>, vector<96x64xbf16>
    "tpu.trace_start"() <{level = 10 : i32, message = "blk,kf->blf"}> : () -> ()
    %cst_4 = arith.constant dense<0.000000e+00> : vector<2x14x64xf32>
    %7 = tpu.matmul %5, %6, %cst_4 {dimension_numbers = #tpu.dot_dimension_numbers<[2], [0], [0, 1], [1], [0, 0, 0, 1, 1, 1], [], []>} : vector<2x14x96xbf16>, vector<96x64xbf16>, vector<2x14x64xf32> -> vector<2x14x64xf32>
    "tpu.trace_stop"() : () -> ()
    %c0_5 = arith.constant 0 : index
    %c0_6 = arith.constant 0 : index
    %8 = vector.load %arg3[%c0_5, %c0_6] : memref<1x64xf32, #tpu.memory_space<vmem>>, vector<1x64xf32>
    %9 = vector.shape_cast %8 : vector<1x64xf32> to vector<1x1x64xf32>
    %10 = vector.broadcast %9 : vector<1x1x64xf32> to vector<2x14x64xf32>
    %11 = arith.addf %7, %10 : vector<2x14x64xf32>
    %cst_7 = arith.constant 0.000000e+00 : f32
    %12 = vector.broadcast %cst_7 : f32 to vector<2x14x64xf32>
    %13 = arith.maximumf %11, %12 : vector<2x14x64xf32>
    %cst_8 = arith.constant dense<0.000000e+00> : vector<2x64xf32>
    %14 = vector.multi_reduction <add>, %13, %cst_8 [1] : vector<2x14x64xf32> to vector<2x64xf32>
    %c0_9 = arith.constant 0 : index
    %c0_10 = arith.constant 0 : index
    %15 = vector.load %arg8[%c0_9, %c0_10] : memref<192x128xf32, #tpu.memory_space<vmem>>, vector<64x128xf32>
    %cst_11 = arith.constant dense<0.000000e+00> : vector<2x128xf32>
    %16 = tpu.matmul %14, %15, %cst_11 {dimension_numbers = #tpu.dot_dimension_numbers<[1], [0], [0], [1], [0, 0, 1, 1], [], []>} : vector<2x64xf32>, vector<64x128xf32>, vector<2x128xf32> -> vector<2x128xf32>
    %17 = arith.addf %1, %16 : vector<2x128xf32>
    %18 = vector.extract_strided_slice %0 {offsets = [0, 0, 0], sizes = [2, 13, 32], strides = [1, 1, 1]} : vector<2x16x32xbf16> to vector<2x13x32xbf16>
    %19 = vector.extract_strided_slice %0 {offsets = [0, 1, 0], sizes = [2, 13, 32], strides = [1, 1, 1]} : vector<2x16x32xbf16> to vector<2x13x32xbf16>
    %20 = vector.extract_strided_slice %0 {offsets = [0, 2, 0], sizes = [2, 13, 32], strides = [1, 1, 1]} : vector<2x16x32xbf16> to vector<2x13x32xbf16>
    %21 = vector.extract_strided_slice %0 {offsets = [0, 3, 0], sizes = [2, 13, 32], strides = [1, 1, 1]} : vector<2x16x32xbf16> to vector<2x13x32xbf16>
    %22 = tpu.concatenate %18, %19, %20, %21 in 2 : vector<2x13x32xbf16>, vector<2x13x32xbf16>, vector<2x13x32xbf16>, vector<2x13x32xbf16> -> vector<2x13x128xbf16>
    %c0_12 = arith.constant 0 : index
    %c0_13 = arith.constant 0 : index
    %23 = vector.load %arg4[%c0_12, %c0_13] : memref<128x64xbf16, #tpu.memory_space<vmem>>, vector<128x64xbf16>
    "tpu.trace_start"() <{level = 10 : i32, message = "blk,kf->blf"}> : () -> ()
    %cst_14 = arith.constant dense<0.000000e+00> : vector<2x13x64xf32>
    %24 = tpu.matmul %22, %23, %cst_14 {dimension_numbers = #tpu.dot_dimension_numbers<[2], [0], [0, 1], [1], [0, 0, 0, 1, 1, 1], [], []>} : vector<2x13x128xbf16>, vector<128x64xbf16>, vector<2x13x64xf32> -> vector<2x13x64xf32>
    "tpu.trace_stop"() : () -> ()
    %c0_15 = arith.constant 0 : index
    %c0_16 = arith.constant 0 : index
    %25 = vector.load %arg5[%c0_15, %c0_16] : memref<1x64xf32, #tpu.memory_space<vmem>>, vector<1x64xf32>
    %26 = vector.shape_cast %25 : vector<1x64xf32> to vector<1x1x64xf32>
    %27 = vector.broadcast %26 : vector<1x1x64xf32> to vector<2x13x64xf32>
    %28 = arith.addf %24, %27 : vector<2x13x64xf32>
    %cst_17 = arith.constant 0.000000e+00 : f32
    %29 = vector.broadcast %cst_17 : f32 to vector<2x13x64xf32>
    %30 = arith.maximumf %28, %29 : vector<2x13x64xf32>
    %cst_18 = arith.constant dense<0.000000e+00> : vector<2x64xf32>
    %31 = vector.multi_reduction <add>, %30, %cst_18 [1] : vector<2x13x64xf32> to vector<2x64xf32>
    %c64 = arith.constant 64 : index
    %c0_19 = arith.constant 0 : index
    %32 = vector.load %arg8[%c64, %c0_19] : memref<192x128xf32, #tpu.memory_space<vmem>>, vector<64x128xf32>
    %cst_20 = arith.constant dense<0.000000e+00> : vector<2x128xf32>
    %33 = tpu.matmul %31, %32, %cst_20 {dimension_numbers = #tpu.dot_dimension_numbers<[1], [0], [0], [1], [0, 0, 1, 1], [], []>} : vector<2x64xf32>, vector<64x128xf32>, vector<2x128xf32> -> vector<2x128xf32>
    %34 = arith.addf %17, %33 : vector<2x128xf32>
    %35 = vector.extract_strided_slice %0 {offsets = [0, 0, 0], sizes = [2, 12, 32], strides = [1, 1, 1]} : vector<2x16x32xbf16> to vector<2x12x32xbf16>
    %36 = vector.extract_strided_slice %0 {offsets = [0, 1, 0], sizes = [2, 12, 32], strides = [1, 1, 1]} : vector<2x16x32xbf16> to vector<2x12x32xbf16>
    %37 = vector.extract_strided_slice %0 {offsets = [0, 2, 0], sizes = [2, 12, 32], strides = [1, 1, 1]} : vector<2x16x32xbf16> to vector<2x12x32xbf16>
    %38 = vector.extract_strided_slice %0 {offsets = [0, 3, 0], sizes = [2, 12, 32], strides = [1, 1, 1]} : vector<2x16x32xbf16> to vector<2x12x32xbf16>
    %39 = vector.extract_strided_slice %0 {offsets = [0, 4, 0], sizes = [2, 12, 32], strides = [1, 1, 1]} : vector<2x16x32xbf16> to vector<2x12x32xbf16>
    %40 = tpu.concatenate %35, %36, %37, %38, %39 in 2 : vector<2x12x32xbf16>, vector<2x12x32xbf16>, vector<2x12x32xbf16>, vector<2x12x32xbf16>, vector<2x12x32xbf16> -> vector<2x12x160xbf16>
    %c0_21 = arith.constant 0 : index
    %c0_22 = arith.constant 0 : index
    %41 = vector.load %arg6[%c0_21, %c0_22] : memref<160x64xbf16, #tpu.memory_space<vmem>>, vector<160x64xbf16>
    "tpu.trace_start"() <{level = 10 : i32, message = "blk,kf->blf"}> : () -> ()
    %cst_23 = arith.constant dense<0.000000e+00> : vector<2x12x64xf32>
    %42 = tpu.matmul %40, %41, %cst_23 {dimension_numbers = #tpu.dot_dimension_numbers<[2], [0], [0, 1], [1], [0, 0, 0, 1, 1, 1], [], []>} : vector<2x12x160xbf16>, vector<160x64xbf16>, vector<2x12x64xf32> -> vector<2x12x64xf32>
    "tpu.trace_stop"() : () -> ()
    %c0_24 = arith.constant 0 : index
    %c0_25 = arith.constant 0 : index
    %43 = vector.load %arg7[%c0_24, %c0_25] : memref<1x64xf32, #tpu.memory_space<vmem>>, vector<1x64xf32>
    %44 = vector.shape_cast %43 : vector<1x64xf32> to vector<1x1x64xf32>
    %45 = vector.broadcast %44 : vector<1x1x64xf32> to vector<2x12x64xf32>
    %46 = arith.addf %42, %45 : vector<2x12x64xf32>
    %cst_26 = arith.constant 0.000000e+00 : f32
    %47 = vector.broadcast %cst_26 : f32 to vector<2x12x64xf32>
    %48 = arith.maximumf %46, %47 : vector<2x12x64xf32>
    %cst_27 = arith.constant dense<0.000000e+00> : vector<2x64xf32>
    %49 = vector.multi_reduction <add>, %48, %cst_27 [1] : vector<2x12x64xf32> to vector<2x64xf32>
    %c128 = arith.constant 128 : index
    %c0_28 = arith.constant 0 : index
    %50 = vector.load %arg8[%c128, %c0_28] : memref<192x128xf32, #tpu.memory_space<vmem>>, vector<64x128xf32>
    %cst_29 = arith.constant dense<0.000000e+00> : vector<2x128xf32>
    %51 = tpu.matmul %49, %50, %cst_29 {dimension_numbers = #tpu.dot_dimension_numbers<[1], [0], [0], [1], [0, 0, 1, 1], [], []>} : vector<2x64xf32>, vector<64x128xf32>, vector<2x128xf32> -> vector<2x128xf32>
    %52 = arith.addf %34, %51 : vector<2x128xf32>
    %c0_30 = arith.constant 0 : index
    %c0_31 = arith.constant 0 : index
    %53 = vector.load %arg9[%c0_30, %c0_31] : memref<1x128xf32, #tpu.memory_space<vmem>>, vector<1x128xf32>
    %54 = vector.broadcast %53 : vector<1x128xf32> to vector<2x128xf32>
    %55 = arith.addf %52, %54 : vector<2x128xf32>
    %c0_32 = arith.constant 0 : index
    %c0_33 = arith.constant 0 : index
    %56 = vector.load %arg10[%c0_32, %c0_33] : memref<2x128xf32, #tpu.memory_space<vmem>>, vector<2x128xf32>
    tpu.vector_store %arg10[%c0_32, %c0_33], %55 {strides = array<i32>} : memref<2x128xf32, #tpu.memory_space<vmem>>, vector<2x128xf32>,
    return
  }
  func.func @transform_0(%arg0: i32) -> (i32, i32, i32) {
    %c0_i32 = arith.constant 0 : i32
    %c0_i32_0 = arith.constant 0 : i32
    %c0_i32_1 = arith.constant 0 : i32
    return %arg0, %c0_i32, %c0_i32_0 : i32, i32, i32
  }
  func.func @transform_1(%arg0: i32) -> (i32, i32) {
    %c0_i32 = arith.constant 0 : i32
    %c0_i32_0 = arith.constant 0 : i32
    %c0_i32_1 = arith.constant 0 : i32
    return %c0_i32, %c0_i32_0 : i32, i32
  }
  func.func @transform_2(%arg0: i32) -> (i32, i32) {
    %c0_i32 = arith.constant 0 : i32
    %c0_i32_0 = arith.constant 0 : i32
    %c0_i32_1 = arith.constant 0 : i32
    return %c0_i32, %c0_i32_0 : i32, i32
  }
  func.func @transform_3(%arg0: i32) -> (i32, i32) {
    %c0_i32 = arith.constant 0 : i32
    %c0_i32_0 = arith.constant 0 : i32
    %c0_i32_1 = arith.constant 0 : i32
    return %c0_i32, %c0_i32_0 : i32, i32
  }
  func.func @transform_4(%arg0: i32) -> (i32, i32) {
    %c0_i32 = arith.constant 0 : i32
    %c0_i32_0 = arith.constant 0 : i32
    %c0_i32_1 = arith.constant 0 : i32
    return %c0_i32, %c0_i32_0 : i32, i32
  }
  func.func @transform_5(%arg0: i32) -> (i32, i32) {
    %c0_i32 = arith.constant 0 : i32
    %c0_i32_0 = arith.constant 0 : i32
    %c0_i32_1 = arith.constant 0 : i32
    return %c0_i32, %c0_i32_0 : i32, i32
  }
  func.func @transform_6(%arg0: i32) -> (i32, i32) {
    %c0_i32 = arith.constant 0 : i32
    %c0_i32_0 = arith.constant 0 : i32
    %c0_i32_1 = arith.constant 0 : i32
    return %c0_i32, %c0_i32_0 : i32, i32
  }
  func.func @transform_7(%arg0: i32) -> (i32, i32) {
    %c0_i32 = arith.constant 0 : i32
    %c0_i32_0 = arith.constant 0 : i32
    %c0_i32_1 = arith.constant 0 : i32
    return %c0_i32, %c0_i32_0 : i32, i32
  }
  func.func @transform_8(%arg0: i32) -> (i32, i32) {
    %c0_i32 = arith.constant 0 : i32
    %c0_i32_0 = arith.constant 0 : i32
    %c0_i32_1 = arith.constant 0 : i32
    return %c0_i32, %c0_i32_0 : i32, i32
  }
  func.func @transform_9(%arg0: i32) -> (i32, i32) {
    %c0_i32 = arith.constant 0 : i32
    %c0_i32_0 = arith.constant 0 : i32
    return %arg0, %c0_i32 : i32, i32
  }
}

</mosaic_0001>

<bundles_post_ra>
// kernel: tpu_custom_call.1
= control target key start
LH: loop header
LB: loop body
LE: loop exit
PB: predicated region body
PF: predicated region fallthrough
CT: control target
= control target key end

     0   :  { %s2432_s15 = smov 64   ;;  %s2433_s21 = smov 32   ;;  %s2979_s0 = inlined_call_operand.vmem [shape: bf16[2,16,32], index: 0, kind: input, shape index: {}]   ;;  %s2980_s1 = inlined_call_operand.vmem [shape: bf16[96,64], index: 1, kind: input, shape index: {}]   ;;  %s2981_s2 = inlined_call_operand.vmem [shape: f32[1,64], index: 2, kind: input, shape index: {}]   ;;  %s2982_s3 = inlined_call_operand.vmem [shape: bf16[128,64], index: 3, kind: input, shape index: {}]   ;;  %s2983_s4 = inlined_call_operand.vmem [shape: f32[1,64], index: 4, kind: input, shape index: {}]   ;;  %s2984_s5 = inlined_call_operand.vmem [shape: bf16[160,64], index: 5, kind: input, shape index: {}]   ;;  %s2985_s6 = inlined_call_operand.vmem [shape: f32[1,64], index: 6, kind: input, shape index: {}]   ;;  %s2986_s7 = inlined_call_operand.vmem [shape: f32[192,128], index: 7, kind: input, shape index: {}]   ;;  %s2987_s8 = inlined_call_operand.vmem [shape: f32[1,128], index: 8, kind: input, shape index: {}]   ;;  %s2988_s9 = inlined_call_operand.hbm [shape: f32[2,128], index: 9, kind: output, shape index: {}]  }
   0x1   :  { %v2495_v0 = vld [vmem:[%s2979_s0 + $0x8] sm:$0xff]   ;;  %v2500_v1 = vld [vmem:[%s2979_s0] sm:$0xff]   ;;  %v2388_v21 = vld [vmem:[%s2982_s3 + $0x10] sm:$0xff]   ;;  %s2434_s28 = smov 96  }
   0x2   :  { %v67_v2 = vrot.slane %v2495_v0, 1  ;;  %v56_v3 = vshrl.u32 %v2495_v0, 16  ;;  %v58_v4 = vshll.u32 %v2495_v0, 16  ;;  %v49_v5 = vshrl.u32 %v2500_v1, 16  ;;  %v2384_v7 = vld [vmem:[%s2982_s3] sm:$0xff]   ;;  %v2386_v15 = vld [vmem:[%s2982_s3 + $0x8] sm:$0xff]  }
   0x3   :  { %v51_v6 = vshll.u32 %v2500_v1, 16  ;;  %v66_v9 = vrot.slane %v2500_v1, 1  ;;  %2259 = vmatprep.subr.bf16.mxu1 %v2384_v7  ;;  %v2385_v13 = vld [vmem:[%s2980_s1] sm:$0xff]   ;;  %v2387_v16 = vld [vmem:[%s2980_s1 + $0x8] sm:$0xff]   ;;  %v2389_v22 = vld [vmem:[%s2980_s1 + $0x10] sm:$0xff]  }
   0x4   :  { %70 = vrot.lane.b32.xlu1 %v67_v2, %s2432_s15  ;;  %v60_v8 = vrot.slane %v58_v4, 1  ;;  %v645_v11 = vrot.slane %v49_v5, 1  ;;  %2260 = vmatpush3.bf16.msra.mxu1 %v2384_v7  ;;  %v648_v17 = vrot.slane %v56_v3, 1  ;;  %v649_v20 = vrot.slane %v58_v4, 2  ;;  %v2390_v23 = vld [vmem:[%s2982_s3 + $0x18] sm:$0xff]   ;;  %v2392_v26 = vld [vmem:[%s2982_s3 + $0x20] sm:$0xff]  }
   0x5   :  { %v53_v10 = vrot.slane %v51_v6, 1  ;;  %v646_v12 = vrot.slane %v51_v6, 2  ;;  %2243 = vmatprep.subr.bf16.mxu0 %v2385_v13  ;;  %2261 = vmatprep.subr.bf16.mxu1 %v2386_v15  ;;  %v2391_v25 = vld [vmem:[%s2980_s1 + $0x18] sm:$0xff]   ;;  %v2393_v27 = vld [vmem:[%s2980_s1 + $0x20] sm:$0xff]   ;;  %v2394_v28 = vld [vmem:[%s2982_s3 + $0x28] sm:$0xff]  }
   0x6   :  { %v61_v14 = vor.u32 %v60_v8, %v56_v3  ;;  %2244 = vmatpush3.bf16.msra.mxu0 %v2385_v13  ;;  %v650_v24 = vor.u32 %v649_v20, %v648_v17  ;;  %v2395_v29 = vld [vmem:[%s2980_s1 + $0x28] sm:$0xff]   ;;  %v2396_v30 = vld [vmem:[%s2982_s3 + $0x30] sm:$0xff]  }
   0x7   :  { %v54_v18 = vor.u32 %v53_v10, %v49_v5  ;;  %v647_v19 = vor.u32 %v646_v12, %v645_v11  ;;  %2245 = vmatprep.subr.bf16.mxu0 %v2387_v16 }
   0x8   :  { %64 = vrot.lane.b32.xlu0 %v61_v14, %s2433_s21  ;;  %68 = vrot.lane.b32.xlu1 %v66_v9, %s2432_s15 }
   0x9   :  { %2262 = vmatpush3.bf16.msra.mxu1 %v2386_v15 }
   0xa   :  { %2263 = vmatprep.subr.bf16.mxu1 %v2388_v21  ;;  %2246 = vmatpush3.bf16.msra.mxu0 %v2387_v16 }
   0xb   :  { %2247 = vmatprep.subr.bf16.mxu0 %v2389_v22 }
   0xc   :  { %62 = vrot.lane.b32.xlu0 %v54_v18, %s2433_s21  ;;  %651 = vrot.lane.b32.xlu1 %v647_v19, %s2434_s28 }
   0xd   :  { %2264 = vmatpush3.bf16.msra.mxu1 %v2388_v21 }
   0xe   :  { %2265 = vmatprep.subr.bf16.mxu1 %v2390_v23  ;;  %2248 = vmatpush3.bf16.msra.mxu0 %v2389_v22 }
   0xf   :  { %2249 = vmatprep.subr.bf16.mxu0 %v2391_v25 }
  0x10   :  { %653 = vrot.lane.b32.xlu0 %v650_v24, %s2434_s28 }
  0x11   :  { %2266 = vmatpush3.bf16.msra.mxu1 %v2390_v23 }
  0x12   :  { %2267 = vmatprep.subr.bf16.mxu1 %v2392_v26  ;;  %2250 = vmatpush3.bf16.msra.mxu0 %v2391_v25 }
  0x13   :  { %2251 = vmatprep.subr.bf16.mxu0 %v2393_v27 }
  0x15   :  { %2268 = vmatpush3.bf16.msra.mxu1 %v2392_v26 }
  0x16   :  { %2269 = vmatprep.subr.bf16.mxu1 %v2394_v28  ;;  %2252 = vmatpush3.bf16.msra.mxu0 %v2393_v27 }
  0x17   :  { %2253 = vmatprep.subr.bf16.mxu0 %v2395_v29 }
  0x19   :  { %2270 = vmatpush3.bf16.msra.mxu1 %v2394_v28 }
  0x1a   :  { %14 = vsyncpa [#allocation3], 0  ;;  %2271 = vmatprep.subr.bf16.mxu1 %v2396_v30  ;;  %v2398_v31 = vld [vmem:[%s2982_s3 + $0x38] sm:$0xff]   ;;  %2254 = vmatpush3.bf16.msra.mxu0 %v2395_v29  ;;  %v2435_v32 = vmov 0   ;;  %v2436_v33 = vmov 1966171168   ;;  %v106_v35 = vlaneseq }
  0x1b   :  { %1953 = vmatprep.subr.bf16.mxu0 %v2435_v32  ;;  %v104_v34 = vunpack.c.l.s4 %v2436_v33  ;;  %vm72_vm0 = vcmask 261120   ;;  %v2437_v39 = vmov 1983009808   ;;  %vm77_vm1 = vcmask 523264   ;;  %s2441_s17 = smov [#allocation2]  }
  0x1c   :  { %v107_v38 = vshrl.u32 %v106_v35, 7  ;;  %v200_v40 = vunpack.c.l.s4 %v2437_v39  ;;  %vm387_vm2 = vcmask 785408   ;;  %v1789_v49 = vrot.slane %v2500_v1, 2  ;;  %s2142_s18 = sshll.u32 %s2441_s17, 4  ;;  %s2143_s18 = int_to_ptr.vmem [resolvable:$true] %s2142_s18 }
  0x1d   :  { %2272 = vmatpush3.bf16.msra.mxu1 %v2396_v30  ;;  %v105_v37 = vunpack.c.0.s8 %v104_v34  ;;  %v1790_v5 = vrot.slane %v2495_v0, 2  ;;  %vm2439_vm3 = vmmov 0   ;;  %vm619_vm4 = vcmask 521216   ;;  %p2413_p1 = scmp.lt.s32.totalorder %s2143_s18, %s2143_s18 }
  0x1e   :  { %2273 = vmatprep.subr.bf16.mxu1 %v2398_v31  ;;  %v201_v45 = vunpack.c.0.s8 %v200_v40  ;;  %vm2025_vm5 = vcmask 519168   ;;  %vm1612_vm6 = vcmask 520192   ;;  %vm1640_vm7 = vcmask 1041409  }
  0x1f   :  { %v2553_v44 = vsub.s32 %v105_v37, %v107_v38 }
  0x20   :  { %v2560_v53 = vsub.s32 %v201_v45, %v107_v38 }
  0x21   :  { %2274 = vmatpush3.bf16.msra.mxu1 %v2398_v31 }
  0x76   :  { %v71_v36 = vpop.permute.xlu1 %70 }
  0x7a   :  { %v65_v41 = vpop.permute.xlu0 %64  ;;  %v69_v42 = vpop.permute.xlu1 %68 }
  0x7b   :  { %v76_v43 = vsel %vm72_vm0, %v2495_v0, %v65_v41 }
  0x7c   :  { %v81_v46 = vsel %vm77_vm1, %v76_v43, %v71_v36 }
  0x7d   :  { %v150_v47 = vcombine.high %v81_v46, %v81_v46  ;;  %v157_v52 = vrot.slane %v81_v46, %v2553_v44 }
  0x7e   :  { %v63_v48 = vpop.permute.xlu0 %62  ;;  %v652_v50 = vpop.permute.xlu1 %651 }
  0x7f   :  { %v74_v51 = vsel %vm72_vm0, %v2500_v1, %v63_v48  ;;  %v164_v58 = vrot.slane %v150_v47, %v2553_v44  ;;  %v165_v2 = vcombine.high %v157_v52, %v157_v52  ;;  %v173_v4 = vrot.slane %v157_v52, %v2553_v44 }
  0x80   :  { %v79_v54 = vsel %vm77_vm1, %v74_v51, %v69_v42 }
  0x81   :  { %v102_v55 = vcombine.high %v79_v54, %v79_v54  ;;  %v109_v56 = vrot.slane %v79_v54, %v2553_v44  ;;  %v656_v57 = vsel %vm387_vm2, %v79_v54, %v652_v50  ;;  %v166_v9 = vcombine.high %v164_v58, %v164_v58 }
  0x82   :  { %v683_v59 = vcombine.high %v656_v57, %v656_v57  ;;  %v690_v60 = vrot.slane %v656_v57, %v2553_v44  ;;  %v1817_v61 = vcombine.low %v656_v57, %v1789_v49  ;;  %v1818_v1 = vcombine.high %v656_v57, %v1789_v49  ;;  %v654_v10 = vpop.permute.xlu0 %653 }
  0x83   :  { %v116_v62 = vrot.slane %v102_v55, %v2553_v44  ;;  %v117_v63 = vcombine.high %v109_v56, %v109_v56  ;;  %v125_v7 = vrot.slane %v109_v56, %v2553_v44  ;;  %v180_v14 = vrot.slane %v164_v58, %v2553_v44 }
  0x84   :  { %v2569_v3 = vrot.slane %v683_v59, %v2553_v44  ;;  %v1825_v8 = vrot.slane %v1817_v61, %v2560_v53  ;;  %v698_v13 = vcombine.high %v690_v60, %v690_v60  ;;  %v2581_v16 = vrot.slane %v690_v60, %v2553_v44 }
  0x85   :  { %v118_v6 = vcombine.high %v116_v62, %v116_v62  ;;  %v132_v11 = vrot.slane %v116_v62, %v2553_v44  ;;  %v139_v12 = vrot.slane %v117_v63, %v2553_v44  ;;  %v1832_v17 = vrot.slane %v1818_v1, %v2560_v53 }
  0x86   :  { %v699_v15 = vcombine.high %v2569_v3, %v2569_v3  ;;  %v187_v18 = vrot.slane %v165_v2, %v2553_v44  ;;  %v2587_v19 = vrot.slane %v2569_v3, %v2553_v44  ;;  %v195_v20 = vcombine.high %v173_v4, %v173_v4 }
  0x87   :  { %v2590_v21 = vsel %vm387_vm2, %v81_v46, %v654_v10  ;;  %v146_v22 = vrot.slane %v118_v6, %v2553_v44  ;;  %v1833_v23 = vcombine.high %v1825_v8, %v1825_v8  ;;  %v194_v27 = vrot.slane %v166_v9, %v2553_v44 }
  0x88   :  { %v197_v24 = vcombine.high %v187_v18, %v187_v18  ;;  %v731_v25 = vcombine.high %v2590_v21, %v2590_v21  ;;  %v738_v26 = vrot.slane %v2590_v21, %v2553_v44  ;;  %v1834_v28 = vcombine.low %v2590_v21, %v1790_v5 }
  0x89   :  { %v148_v29 = vcombine.high %v132_v11, %v132_v11  ;;  %v215_v30 = vcombine.low %v125_v7, %v139_v12  ;;  %v196_v31 = vcombine.high %v180_v14, %v180_v14  ;;  %v264_v36 = vcombine.low %v187_v18, %v195_v20 }
  0x8a   :  { %v745_v33 = vrot.slane %v731_v25, %v2553_v44  ;;  %v746_v34 = vcombine.high %v738_v26, %v738_v26  ;;  %v754_v35 = vrot.slane %v738_v26, %v2553_v44  ;;  %v2604_v37 = vrot.slane %v1834_v28, %v2560_v53 }
  0x8b   :  { %v2153_v38 = vcombine.high %v125_v7, %v139_v12  ;;  %v217_v39 = vcombine.low %v132_v11, %v146_v22  ;;  %v265_v40 = vcombine.low %v197_v24, %v180_v14  ;;  %v720_v45 = vrot.slane %v698_v13, %v2553_v44  ;;  %v2397_v24 = vld [vmem:[%s2984_s5] sm:$0xff]  }
  0x8c   :  { %v747_v41 = vcombine.high %v745_v33, %v745_v33  ;;  %v761_v42 = vrot.slane %v745_v33, %v2553_v44  ;;  %v768_v43 = vrot.slane %v746_v34, %v2553_v44  ;;  %v776_v46 = vcombine.high %v754_v35, %v754_v35 }
  0x8d   :  { %v218_v47 = vcombine.low %v148_v29, %v173_v4  ;;  %v225_v48 = vrot.slane %v215_v30, %v2553_v44  ;;  %v729_v49 = vcombine.high %v2587_v19, %v2587_v19  ;;  %v1852_v50 = vcombine.low %v1825_v8, %v1833_v23 }
  0x8e   :  { %v775_v51 = vrot.slane %v747_v41, %v2553_v44  ;;  %v1853_v52 = vcombine.low %v1832_v17, %v2604_v37  ;;  %v778_v54 = vcombine.high %v768_v43, %v768_v43  ;;  %v801_v55 = vunpack.i.h.s16 %v761_v42 }
  0x8f   :  { %v232_v56 = vrot.slane %v2153_v38, %v2553_v44  ;;  %v239_v57 = vrot.slane %v217_v39, %v2553_v44  ;;  %v246_v58 = vrot.slane %v218_v47, %v2553_v44  ;;  %v266_v59 = vcombine.low %v194_v27, %v196_v31 }
  0x90   :  { %v273_v60 = vrot.slane %v264_v36, %v2553_v44  ;;  %v280_v61 = vrot.slane %v265_v40, %v2553_v44  ;;  %v795_v62 = vunpack.i.h.s16 %v768_v43  ;;  %v797_v63 = vunpack.i.h.s16 %v776_v46  ;;  %v2399_v40 = vld [vmem:[%s2984_s5 + $0x8] sm:$0xff]  }
  0x91   :  { %v2168_v1 = vpack.i.b16 %v775_v51, %v801_v55  ;;  %v247_v2 = vcombine.low %v225_v48, %v232_v56  ;;  %v248_v3 = vcombine.low %v239_v57, %v246_v58  ;;  %v287_v4 = vrot.slane %v266_v59, %v2553_v44  ;;  %v2401_v57 = vld [vmem:[%s2984_s5 + $0x18] sm:$0xff]   ;;  %v2402_v58 = vld [vmem:[%s2984_s5 + $0x20] sm:$0xff]   ;;  %v2403_v59 = vld [vmem:[%s2984_s5 + $0x28] sm:$0xff]  }
  0x92   :  { %v288_v6 = vcombine.low %v273_v60, %v280_v61  ;;  %v727_v7 = vrot.slane %v699_v15, %v2553_v44  ;;  %v2622_v8 = vrot.slane %v1852_v50, %v2560_v53  ;;  %v2625_v9 = vrot.slane %v1853_v52, %v2560_v53  ;;  %v2404_v60 = vld [vmem:[%s2984_s5 + $0x30] sm:$0xff]  }
  0x93   :  { %v793_v10 = vunpack.i.h.s16 %v754_v35  ;;  %v2163_v11 = vpack.i.b16 %v754_v35, %v729_v49  ;;  %v255_v12 = vrot.slane %v247_v2, %v2553_v44  ;;  %v262_v13 = vrot.slane %v248_v3, %v2553_v44  ;;  %v2406_v2 = vld [vmem:[%s2984_s5 + $0x40] sm:$0xff]  }
  0x94   :  { %v295_v14 = vrot.slane %v288_v6, %v2553_v44  ;;  %v867_v17 = vcombine.low %v2581_v16, %v720_v45  ;;  %v302_v18 = vrot.slane %v287_v4, %v2553_v44  ;;  %v2170_v15 = vcombine.high %v2581_v16, %v720_v45  ;;  %v1630_v4 = vld [vmem:[%s2986_s7 + $0x40] sm:$0xff]  ;;  %v1631_v6 = vld [vmem:[%s2986_s7 + $0x48] sm:$0xff] }
  0x95   :  { %v2164_v20 = vpack.i.b16 %v768_v43, %v793_v10  ;;  %v869_v22 = vcombine.low %v2587_v19, %v727_v7  ;;  %v263_v23 = vcombine.low %v255_v12, %v262_v13  ;;  %v777_v26 = vcombine.high %v761_v42, %v761_v42  ;;  %v1632_v7 = vld [vmem:[%s2986_s7 + $0x50] sm:$0xff]  ;;  %v1635_v12 = vld [vmem:[%s2986_s7 + $0x68] sm:$0xff] }
  0x96   :  { %v877_v25 = vrot.slane %v867_v17, %v2553_v44  ;;  %v799_v27 = vunpack.i.h.s16 %v778_v54  ;;  %v303_v28 = vcombine.low %v295_v14, %v302_v18  ;;  %v884_v30 = vrot.slane %v2170_v15, %v2553_v44  ;;  %v1636_v13 = vld [vmem:[%s2986_s7 + $0x70] sm:$0xff]  ;;  %v1637_v17 = vld [vmem:[%s2986_s7 + $0x78] sm:$0xff]  ;;  %v2162_v15 = vld [vmem:[%s2983_s4] ss:$0 sm:$0xff] }
  0x97   :  { %v870_v29 = vcombine.low %v2163_v11, %v2164_v20  ;;  %v803_v31 = vunpack.i.h.s16 %v775_v51  ;;  %2255 = vmatprep.mubr.msk.bf16.mxu0 %vm387_vm2, %v263_v23  ;;  %v1869_v16 = vcombine.high %v2622_v8, %v2625_v9  ;;  %v2165_v19 = vpack.i.b16 %v776_v46, %v795_v62  ;;  %v2400_v51 = vld [vmem:[%s2984_s5 + $0x10] sm:$0xff]   ;;  %v2405_v62 = vld [vmem:[%s2984_s5 + $0x38] sm:$0xff]   ;;  %v1634_v11 = vld [vmem:[%s2986_s7 + $0x60] sm:$0xff] }
  0x98   :  { %v2166_v33 = vpack.i.b16 %v778_v54, %v797_v63  ;;  %v2167_v34 = vpack.i.b16 %v761_v42, %v799_v27  ;;  %2256 = vmatmul.mubr.msk.bf16.vlgmr.msra.gmra.mrb[0].mxu0 %vm387_vm2, %v303_v28  ;;  %v891_v35 = vrot.slane %v869_v22, %v2553_v44  ;;  %v899_v38 = vcombine.low %v877_v25, %v884_v30  ;;  %v2152_v25 = vld [vmem:[%s2981_s2] ss:$0 sm:$0xff] }
  0x99   :  { %v898_v36 = vrot.slane %v870_v29, %v2553_v44  ;;  %v2169_v39 = vpack.i.b16 %v777_v26, %v803_v31  ;;  %1954 = vmatpush1.bf16.msra.mxu0 %v2397_v24  ;;  %2194 = vmatprep.mubr.msk.bf16.mxu0 %vm72_vm0, %v1869_v16  ;;  %v1835_v61 = vcombine.high %v2590_v21, %v1790_v5  ;;  %v2407_v5 = vld [vmem:[%s2984_s5 + $0x48] sm:$0xff]   ;;  %v2440_v20 = vmov 0.0  }
  0x9a   :  { %v916_v41 = vcombine.low %v2165_v19, %v2166_v33  ;;  %v917_v43 = vcombine.low %v2167_v34, %v2168_v1  ;;  %1955 = vmatprep.subr.bf16.mxu0 %v2435_v32  ;;  %v907_v48 = vrot.slane %v899_v38, %v2553_v44  ;;  %v1850_v63 = vcombine.high %v2604_v37, %v2604_v37 }
  0x9b   :  { %v900_v45 = vcombine.low %v891_v35, %v898_v36  ;;  %v938_v47 = vrot.slane %v2169_v39, %v2553_v44  ;;  %v1849_v1 = vrot.slane %v1835_v61, %v2560_v53  ;;  %v1868_v37 = vcombine.low %v2622_v8, %v2625_v9  ;;  %v1633_v8 = vld [vmem:[%s2986_s7 + $0x58] sm:$0xff] }
  0x9c   :  { %v924_v42 = vrot.slane %v916_v41, %v2553_v44  ;;  %v931_v46 = vrot.slane %v917_v43, %v2553_v44  ;;  %v2438_v9 = vmov 0.0|0.0   ;;  %v2340_v10 = vpack.c.bf16 %v1633_v8, %v1632_v7 }
  0x9d   :  { %v914_v49 = vrot.slane %v900_v45, %v2553_v44  ;;  %1956 = vmatpush1.bf16.msra.mxu0 %v2399_v40  ;;  %v953_v55 = vrot.slane %v938_v47, %v2553_v44  ;;  %v1870_v0 = vcombine.low %v1850_v63, %v1849_v1  ;;  %2336 = vmatprep.subr.bf16.mxu1 %v2438_v9 }
  0x9e   :  { %v939_v50 = vcombine.low %v924_v42, %v931_v46  ;;  %1957 = vmatprep.subr.bf16.mxu0 %v2435_v32  ;;  %v2343_v14 = vpack.c.bf16 %v1635_v12, %v1634_v11  ;;  %v2346_v18 = vpack.c.bf16 %v1637_v17, %v1636_v13  ;;  %v805_v22 = vcombine.high %v2162_v15, %v2162_v15 }
  0x9f   :  { %v915_v52 = vcombine.low %v907_v48, %v914_v49  ;;  %v1877_v21 = vrot.slane %v1870_v0, %v2560_v53  ;;  %v812_v23 = vrot.slane %v2162_v15, %v2553_v44  ;;  %v198_v28 = vcombine.high %v2152_v25, %v2152_v25 }
  0xa0   :  { %v946_v54 = vrot.slane %v939_v50, %v2553_v44  ;;  %v819_v24 = vrot.slane %v805_v22, %v2553_v44  ;;  %v205_v19 = vrot.slane %v2152_v25, %v2560_v53 }
  0xa1   :  { %2275 = vmatprep.mubr.bf16.mxu1 %v915_v52  ;;  %1958 = vmatpush1.bf16.msra.mxu0 %v2400_v51  ;;  %v1878_v3 = vcombine.high %v1877_v21, %v1877_v21  ;;  %v820_v26 = vcombine.high %v812_v23, %v812_v23  ;;  %v828_v29 = vrot.slane %v812_v23, %v2553_v44 }
  0xa2   :  { %v954_v56 = vcombine.low %v946_v54, %v953_v55  ;;  %1959 = vmatprep.subr.bf16.mxu0 %v2435_v32  ;;  %v821_v27 = vcombine.high %v819_v24, %v819_v24  ;;  %v835_v30 = vrot.slane %v819_v24, %v2553_v44  ;;  %v212_v33 = vrot.slane %v198_v28, %v2560_v53 }
  0xa3   :  { %v842_v31 = vrot.slane %v820_v26, %v2553_v44  ;;  %v850_v34 = vcombine.high %v828_v29, %v828_v29  ;;  %v213_v39 = vcombine.high %v205_v19, %v205_v19 }
  0xa4   :  { %2276 = vmatmul.mubr.bf16.vlgmr.msra.gmra.mrb[0].mxu1 %v954_v56  ;;  %v849_v16 = vrot.slane %v821_v27, %v2553_v44  ;;  %v851_v35 = vcombine.high %v835_v30, %v835_v30  ;;  %v214_v40 = vcombine.high %v212_v33, %v212_v33  ;;  %v357_v55 = vcombine.low %v212_v33, %v205_v19 }
  0xa5   :  { %1960 = vmatpush1.bf16.msra.mxu0 %v2401_v57  ;;  %2295 = vmatprep.mubr.msk.f32.mxu1 %vm2439_vm3, %v2440_v20  ;;  %v852_v36 = vcombine.high %v842_v31, %v842_v31  ;;  %v1055_v41 = vcombine.low %v842_v31, %v850_v34  ;;  %v1005_v46 = vcombine.low %v828_v29, %v842_v31 }
  0xa6   :  { %1961 = vmatprep.subr.bf16.mxu0 %v2435_v32  ;;  %v853_v38 = vcombine.high %v849_v16, %v849_v16  ;;  %v1080_v45 = vcombine.low %v849_v16, %v851_v35  ;;  %v2179_v47 = vcombine.high %v828_v29, %v842_v31  ;;  %v1007_v48 = vcombine.low %v835_v30, %v849_v16 }
  0xa7   :  { %v1079_v43 = vcombine.low %v852_v36, %v835_v30  ;;  %v2180_v49 = vcombine.high %v835_v30, %v849_v16  ;;  %v366_v50 = vcombine.low %v213_v39, %v212_v33  ;;  %v367_v51 = vcombine.low %v214_v40, %v205_v19 }
  0xa8   :  { %v1081_v42 = vcombine.low %v853_v38, %v828_v29  ;;  %v340_v52 = vcombine.low %v205_v19, %v213_v39  ;;  %v341_v54 = vcombine.low %v212_v33, %v214_v40  ;;  %v1054_v56 = vcombine.low %v835_v30, %v828_v29  ;;  %v2780_v40 = vld [vmem:[%s2985_s6] ss:$0 sm:$0xff] }
  0xa9   :  { %1962 = vmatpush1.bf16.msra.mxu0 %v2402_v58  ;;  %v1069_v57 = vrot.slane %v1055_v41, %v2553_v44  ;;  %v2746_v58 = vrot.slane %v1079_v43, %v2553_v44  ;;  %v1015_v61 = vrot.slane %v1005_v46, %v2553_v44  ;;  %v1029_v63 = vrot.slane %v1007_v48, %v2553_v44 }
  0xaa   :  { %1963 = vmatprep.subr.bf16.mxu0 %v2435_v32  ;;  %v1036_v1 = vrot.slane %v2180_v49, %v2553_v44  ;;  %v381_v0 = vrot.slane %v367_v51, %v2560_v53 }
  0xab   :  { %v1126_v39 = vrot.slane %v2746_v58, %v2553_v44 }
  0xac   :  { %v1038_v7 = vcombine.low %v1029_v63, %v1036_v1 }
  0xad   :  { %1964 = vmatpush1.bf16.msra.mxu0 %v2403_v59  ;;  %v1095_v59 = vrot.slane %v1080_v45, %v2553_v44 }
  0xae   :  { %1965 = vmatprep.subr.bf16.mxu0 %v2435_v32  ;;  %v1052_v15 = vrot.slane %v1038_v7, %v2553_v44 }
  0xb1   :  { %1966 = vmatpush1.bf16.msra.mxu0 %v2404_v60  ;;  %v1102_v60 = vrot.slane %v1081_v42, %v2553_v44 }
  0xb2   :  { %1967 = vmatprep.subr.bf16.mxu0 %v2435_v32 }
  0xb5   :  { %1968 = vmatpush1.bf16.msra.mxu0 %v2405_v62  ;;  %v1022_v62 = vrot.slane %v2179_v47, %v2553_v44 }
  0xb6   :  { %1969 = vmatprep.subr.bf16.mxu0 %v2435_v32 }
  0xb9   :  { %1970 = vmatpush1.bf16.msra.mxu0 %v2406_v2  ;;  %v374_v2 = vrot.slane %v366_v50, %v2560_v53 }
  0xba   :  { %1971 = vmatprep.subr.bf16.mxu0 %v2435_v32  ;;  %v2337_v32 = vpack.c.bf16 %v1631_v6, %v1630_v4  ;;  %v1104_v4 = vcombine.low %v1102_v60, %v1069_v57  ;;  %v364_v6 = vrot.slane %v357_v55, %v2560_v53 }
  0xbb   :  { %v382_v8 = vcombine.low %v374_v2, %v381_v0 }
  0xbc   :  { %2338 = vmatpush3.bf16.msra.mxu1 %v2337_v32  ;;  %v1037_v32 = vcombine.low %v1015_v61, %v1022_v62  ;;  %v1118_v13 = vrot.slane %v1104_v4, %v2553_v44 }
  0xbd   :  { %1972 = vmatpush1.bf16.msra.mxu0 %v2407_v5  ;;  %2339 = vmatprep.subr.bf16.mxu1 %v2438_v9  ;;  %v348_v5 = vrot.slane %v340_v52, %v2560_v53 }
  0xbf   :  { %v365_v17 = vcombine.low %v348_v5, %v364_v6 }
  0xc0   :  { %1986 = vmatmul.mubr.bf16.vlgmr.msra.gmra.mrb[4].mxu0 %v1868_v37  ;;  %2341 = vmatpush3.bf16.msra.mxu1 %v2340_v10  ;;  %v1062_v37 = vrot.slane %v1054_v56, %v2553_v44 }
  0xc1   :  { %2195 = vmatprep.mubr.msk.bf16.mxu0 %vm72_vm0, %v1878_v3  ;;  %2342 = vmatprep.subr.bf16.mxu1 %v2438_v9  ;;  %v1103_v3 = vcombine.low %v2746_v58, %v1095_v59 }
  0xc2   :  { %v1070_v11 = vcombine.low %v1062_v37, %v1069_v57 }
  0xc3   :  { %v1111_v12 = vrot.slane %v1103_v3, %v2553_v44 }
  0xc4   :  { %2344 = vmatpush3.bf16.msra.mxu1 %v2343_v14  ;;  %v2768_v26 = vrot.slane %v1070_v11, %v2553_v44 }
  0xc5   :  { %2345 = vmatprep.subr.bf16.mxu1 %v2438_v9  ;;  %v1119_v31 = vcombine.low %v1111_v12, %v1118_v13 }
  0xc8   :  { %1994 = vmatmul.mubr.bf16.gmra.mrb[8].mxu0 %v1877_v21  ;;  %2347 = vmatpush3.bf16.msra.mxu1 %v2346_v18  ;;  %v355_v21 = vrot.slane %v341_v54, %v2560_v53  ;;  %v2764_v18 = vrot.slane %v1037_v32, %v2553_v44  ;;  %v2787_v54 = vcombine.high %v2780_v40, %v2780_v40 }
  0xc9   :  { %2348 = vmatprep.subr.bf16.mxu1 %v2438_v9 }
  0xca   :  { %v356_v10 = vcombine.low %v348_v5, %v355_v21  ;;  %v1053_v34 = vcombine.low %v2764_v18, %v1052_v15  ;;  %v1078_v42 = vcombine.low %v2764_v18, %v2768_v26 }
 0x16b   :  { %v2257_v14 = vpop.f32.mrb[0].mxu0 }
 0x16c   :  { %v437_v22 = vadd.f32 %v2257_v14, %v382_v8  ;;  %v428_v23 = vpop.f32.mrb[1].mxu0 }
 0x16d   :  { %v429_v24 = vadd.f32 %v428_v23, %v356_v10  ;;  %v2258_v25 = vpop.f32.mrb[2].mxu0 }
 0x16e   :  { %v481_v27 = vcombine.high %v437_v22, %v437_v22  ;;  %v488_v28 = vrot.slane %v437_v22, %v2560_v53  ;;  %v440_v29 = vadd.f32 %v2258_v25, %v374_v2  ;;  %v431_v30 = vpop.f32.mrb[3].mxu0 }
 0x16f   :  { %v447_v16 = vcombine.high %v429_v24, %v429_v24  ;;  %v454_v19 = vrot.slane %v429_v24, %v2560_v53  ;;  %v432_v33 = vadd.f32 %v431_v30, %v365_v17 }
 0x170   :  { %v495_v35 = vrot.slane %v481_v27, %v2560_v53  ;;  %v496_v36 = vcombine.high %v488_v28, %v488_v28  ;;  %v504_v38 = vrot.slane %v440_v29, %v2560_v53  ;;  %v528_v1 = vmax.f32 %v488_v28, 0.0 }
 0x171   :  { %v461_v41 = vrot.slane %v447_v16, %v2560_v53  ;;  %v462_v43 = vcombine.high %v454_v19, %v454_v19  ;;  %v464_v45 = vcombine.high %v432_v33, %v432_v33  ;;  %v520_v51 = vmax.f32 %v454_v19, 0.0 }
 0x172   :  { %v497_v46 = vcombine.high %v495_v35, %v495_v35  ;;  %v529_v47 = vmax.f32 %v496_v36, 0.0  ;;  %v530_v48 = vmax.f32 %v495_v35, 0.0  ;;  %v505_v49 = vcombine.high %v504_v38, %v504_v38 }
 0x173   :  { %v463_v50 = vcombine.high %v461_v41, %v461_v41  ;;  %v521_v52 = vmax.f32 %v462_v43, 0.0  ;;  %v532_v56 = vmax.f32 %v504_v38, 0.0  ;;  %v471_v59 = vrot.slane %v432_v33, %v2560_v53 }
 0x174   :  { %v531_v55 = vmax.f32 %v497_v46, 0.0  ;;  %v533_v57 = vmax.f32 %v505_v49, 0.0  ;;  %v522_v60 = vmax.f32 %v461_v41, 0.0  ;;  %v478_v63 = vrot.slane %v464_v45, %v2560_v53 }
 0x175   :  { %v523_v61 = vmax.f32 %v463_v50, 0.0  ;;  %v548_v62 = vcombine.low %v520_v51, %v521_v52  ;;  %v582_v2 = vcombine.low %v529_v47, %v530_v48  ;;  %v479_v5 = vcombine.high %v471_v59, %v471_v59 }
 0x176   :  { %v598_v0 = vcombine.low %v531_v55, %v532_v56  ;;  %v612_v3 = vrot.slane %v533_v57, %v2560_v53  ;;  %v480_v4 = vcombine.high %v478_v63, %v478_v63  ;;  %v524_v6 = vmax.f32 %v471_v59, 0.0 }
 0x177   :  { %v2277_v21 = vpop.f32.mrb[0].mxu1  ;;  %v549_v37 = vcombine.low %v522_v60, %v523_v61  ;;  %v525_v8 = vmax.f32 %v479_v5, 0.0  ;;  %v526_v10 = vmax.f32 %v478_v63, 0.0  ;;  %v556_v13 = vrot.slane %v548_v62, %v2560_v53 }
 0x178   :  { %v1165_v32 = vpop.f32.mrb[1].mxu1  ;;  %v605_v7 = vrot.slane %v598_v0, %v2560_v53  ;;  %v1174_v11 = vadd.f32 %v2277_v21, %v1119_v31  ;;  %v527_v17 = vmax.f32 %v480_v4, 0.0  ;;  %v1942_v27 = vcombine.low %v2780_v40, %v2780_v40 }
 0x179   :  { %v2278_v12 = vpop.f32.mrb[2].mxu1  ;;  %v563_v14 = vrot.slane %v549_v37, %v2560_v53  ;;  %v1166_v15 = vadd.f32 %v1165_v32, %v1053_v34  ;;  %v565_v24 = vcombine.low %v524_v6, %v525_v8  ;;  %v596_v16 = vrot.slane %v582_v2, %v2560_v53 }
 0x17a   :  { %v2795_v22 = vpop.f32.mrb[3].mxu1  ;;  %v613_v23 = vcombine.low %v605_v7, %v612_v3  ;;  %v1282_v25 = vcombine.high %v1174_v11, %v1174_v11  ;;  %v581_v29 = vcombine.low %v527_v17, %v528_v1  ;;  %v1289_v30 = vrot.slane %v1174_v11, %v2553_v44 }
 0x17b   :  { %v564_v28 = vcombine.low %v556_v13, %v563_v14  ;;  %v1184_v31 = vcombine.high %v1166_v15, %v1166_v15  ;;  %v572_v19 = vrot.slane %v565_v24, %v2560_v53  ;;  %v579_v33 = vrot.slane %v526_v10, %v2560_v53 }
 0x17c   :  { %v1296_v34 = vrot.slane %v1282_v25, %v2553_v44  ;;  %v589_v35 = vrot.slane %v581_v29, %v2560_v53  ;;  %v1297_v36 = vcombine.high %v1289_v30, %v1289_v30  ;;  %v2806_v38 = vrot.slane %v1289_v30, %v2553_v44 }
 0x17d   :  { %v1191_v41 = vrot.slane %v1166_v15, %v2553_v44  ;;  %v618_v43 = vsel %vm77_vm1, %v564_v28, 0.0  ;;  %v580_v45 = vcombine.low %v572_v19, %v579_v33  ;;  %v1198_v53 = vrot.slane %v1184_v31, %v2553_v44 }
 0x17e   :  { %v1298_v46 = vcombine.high %v1296_v34, %v1296_v34  ;;  %v1312_v47 = vrot.slane %v1296_v34, %v2553_v44  ;;  %v597_v48 = vcombine.low %v589_v35, %v596_v16  ;;  %v1319_v49 = vrot.slane %v1297_v36, %v2553_v44 }
 0x17f   :  { %v1327_v50 = vcombine.high %v2806_v38, %v2806_v38  ;;  %v629_v51 = vsel %vm619_vm4, %v613_v23, 0.0  ;;  %v620_v52 = vsel %vm619_vm4, %v580_v45, 0.0  ;;  %v1199_v21 = vcombine.high %v1191_v41, %v1191_v41 }
 0x180   :  { %v1326_v55 = vrot.slane %v1298_v46, %v2553_v44  ;;  %v1328_v56 = vcombine.high %v1312_v47, %v1312_v47  ;;  %v621_v57 = vadd.f32 %v620_v52, %v618_v43  ;;  %v628_v59 = vsel %vm77_vm1, %v597_v48, 0.0 }
 0x181   :  { %v1329_v60 = vcombine.high %v1319_v49, %v1319_v49  ;;  %v1396_v61 = vmax.f32 %v1319_v49, 0.0  ;;  %v2819_v62 = vadd.f32 %v629_v51, %v628_v59  ;;  %v1397_v63 = vmax.f32 %v1327_v50, 0.0 }
 0x182   :  { %v1400_v1 = vmax.f32 %v1326_v55, 0.0  ;;  %v1401_v2 = vmax.f32 %v1328_v56, 0.0  ;;  %v1399_v5 = vmax.f32 %v1312_v47, 0.0  ;;  %v1200_v37 = vcombine.high %v1198_v53, %v1198_v53 }
 0x183   :  { %v1398_v0 = vmax.f32 %v1329_v60, 0.0  ;;  %v1207_v3 = vrot.slane %v1191_v41, %v2553_v44  ;;  %v1214_v4 = vrot.slane %v1198_v53, %v2553_v44  ;;  %v1941_v6 = vcombine.low %v2780_v40, %v2787_v54 }
 0x184   :  { %v1943_v32 = vcombine.low %v2787_v54, %v2780_v40  ;;  %v1221_v8 = vrot.slane %v1199_v21, %v2553_v44  ;;  %v1228_v10 = vrot.slane %v1200_v37, %v2553_v44  ;;  %v1177_v11 = vadd.f32 %v2278_v12, %v1126_v39 }
 0x185   :  { %v1522_v7 = vcombine.low %v1398_v0, %v1399_v5  ;;  %v1521_v13 = vcombine.low %v1396_v61, %v1397_v63  ;;  %v1568_v14 = vcombine.low %v1400_v1, %v1401_v2  ;;  %v1229_v17 = vcombine.high %v1207_v3, %v1207_v3 }
 0x186   :  { %v1230_v15 = vcombine.high %v1214_v4, %v1214_v4  ;;  %v1231_v23 = vcombine.high %v1221_v8, %v1221_v8  ;;  %v1232_v24 = vcombine.high %v1228_v10, %v1228_v10  ;;  %v1380_v25 = vmax.f32 %v1221_v8, 0.0 }
 0x187   :  { %v1330_v28 = vcombine.high %v1326_v55, %v1326_v55  ;;  %v1550_v29 = vrot.slane %v1522_v7, %v2553_v44  ;;  %v1379_v30 = vmax.f32 %v1207_v3, 0.0  ;;  %v1381_v31 = vmax.f32 %v1229_v17, 0.0 }
 0x188   :  { %v1384_v16 = vmax.f32 %v1228_v10, 0.0  ;;  %v1382_v19 = vmax.f32 %v1231_v23, 0.0  ;;  %v1383_v33 = vmax.f32 %v1214_v4, 0.0  ;;  %v1385_v34 = vmax.f32 %v1230_v15, 0.0 }
 0x189   :  { %v1386_v35 = vmax.f32 %v1232_v24, 0.0  ;;  %v622_v36 = vrot.slane %v621_v57, 4  ;;  %v1395_v58 = vmax.f32 %v2806_v38, 0.0  ;;  %v1543_v39 = vrot.slane %v1521_v13, %v2553_v44 }
 0x18a   :  { %v1337_v12 = vrot.slane %v1177_v11, %v2553_v44  ;;  %v1431_v41 = vcombine.low %v1379_v30, %v1380_v25  ;;  %v1432_v43 = vcombine.low %v1381_v31, %v1382_v19  ;;  %v1433_v45 = vcombine.low %v1383_v33, %v1384_v16 }
 0x18b   :  { %v1434_v46 = vcombine.low %v1385_v34, %v1386_v35  ;;  %v1402_v49 = vmax.f32 %v1330_v28, 0.0  ;;  %v1169_v50 = vadd.f32 %v2795_v22, %v1078_v42  ;;  %v2841_v53 = vcombine.low %v1543_v39, %v1550_v29 }
 0x18c   :  { %v1338_v47 = vcombine.high %v1337_v12, %v1337_v12  ;;  %v1345_v48 = vrot.slane %v1337_v12, %v2553_v44  ;;  %v1448_v51 = vrot.slane %v1432_v43, %v2553_v44  ;;  %v1576_v55 = vrot.slane %v1568_v14, %v2553_v44 }
 0x18d   :  { %v1462_v52 = vrot.slane %v1434_v46, %v2553_v44  ;;  %v1233_v60 = vcombine.high %v1169_v50, %v1169_v50  ;;  %v1240_v61 = vrot.slane %v1169_v50, %v2553_v44  ;;  %v1441_v63 = vrot.slane %v1431_v41, %v2553_v44 }
 0x18e   :  { %v1352_v56 = vrot.slane %v1338_v47, %v2553_v44  ;;  %v1403_v59 = vmax.f32 %v1345_v48, 0.0  ;;  %v1455_v18 = vrot.slane %v1433_v45, %v2553_v44  ;;  %v623_v26 = vadd.f32 %v622_v36, %v621_v57 }
 0x18f   :  { %v631_v42 = vrot.slane %v2819_v62, 4  ;;  %v1247_v2 = vrot.slane %v1233_v60, %v2553_v44  ;;  %v1248_v0 = vcombine.high %v1240_v61, %v1240_v61  ;;  %v1566_v5 = vrot.slane %v2841_v53, %v2553_v44 }
 0x190   :  { %v1404_v22 = vmax.f32 %v1352_v56, 0.0  ;;  %v1569_v1 = vcombine.low %v1402_v49, %v1403_v59  ;;  %v1463_v21 = vcombine.low %v1441_v63, %v1448_v51  ;;  %v1464_v37 = vcombine.low %v1455_v18, %v1462_v52 }
 0x191   :  { %v1256_v3 = vrot.slane %v1240_v61, %v2553_v44  ;;  %v1249_v8 = vcombine.high %v1247_v2, %v1247_v2  ;;  %v1263_v57 = vrot.slane %v1247_v2, %v2553_v44  ;;  %v1270_v10 = vrot.slane %v1248_v0, %v2553_v44 }
 0x192   :  { %v1583_v4 = vrot.slane %v1569_v1, %v2553_v44  ;;  %v1590_v7 = vrot.slane %v1404_v22, %v2553_v44  ;;  %v624_v14 = vrot.slane %v623_v26, 2  ;;  %v2860_v17 = vadd.f32 %v631_v42, %v2819_v62 }
 0x193   :  { %v1278_v11 = vcombine.high %v1256_v3, %v1256_v3  ;;  %v1987_v13 = vpop.f32.mrb[4].mxu0  ;;  %v1277_v23 = vrot.slane %v1249_v8, %v2553_v44  ;;  %v1279_v24 = vcombine.high %v1263_v57, %v1263_v57  ;;  %v1387_v25 = vmax.f32 %v1256_v3, 0.0 }
 0x194   :  { %v1591_v15 = vcombine.low %v1576_v55, %v1583_v4  ;;  %v1989_v28 = vpop.f32.mrb[5].mxu0  ;;  %v1605_v29 = vrot.slane %v1590_v7, %v2553_v44  ;;  %v1280_v30 = vcombine.high %v1270_v10, %v1270_v10  ;;  %v1388_v31 = vmax.f32 %v1270_v10, 0.0 }
 0x195   :  { %v1391_v16 = vmax.f32 %v1263_v57, 0.0  ;;  %v1990_v19 = vpop.f32.mrb[6].mxu0  ;;  %v1281_v34 = vcombine.high %v1277_v23, %v1277_v23  ;;  %v1392_v35 = vmax.f32 %v1277_v23, 0.0  ;;  %v1393_v36 = vmax.f32 %v1279_v24, 0.0 }
 0x196   :  { %v1598_v33 = vrot.slane %v1591_v15, %v2553_v44  ;;  %v1992_v62 = vpop.f32.mrb[7].mxu0  ;;  %v1389_v39 = vmax.f32 %v1278_v11, 0.0  ;;  %v1390_v12 = vmax.f32 %v1280_v30, 0.0  ;;  %v1480_v41 = vcombine.low %v1387_v25, %v1388_v31 }
 0x197   :  { %v1988_v43 = vadd.f32 %v1987_v13, %v1941_v6  ;;  %v1394_v46 = vmax.f32 %v1281_v34, 0.0  ;;  %v1519_v47 = vcombine.low %v1392_v35, %v1393_v36  ;;  %v1991_v48 = vadd.f32 %v1990_v19, %v1942_v27 }
 0x198   :  { %v1606_v45 = vcombine.low %v1598_v33, %v1605_v29  ;;  %v1478_v49 = vrot.slane %v1464_v37, %v2553_v44  ;;  %v1481_v50 = vcombine.low %v1389_v39, %v1390_v12  ;;  %v1502_v51 = vrot.slane %v1391_v16, %v2553_v44 }
 0x199   :  { %v2004_v52 = vcombine.high %v1988_v43, %v1988_v43  ;;  %v1471_v55 = vrot.slane %v1463_v21, %v2553_v44  ;;  %v1488_v56 = vrot.slane %v1480_v41, %v2553_v44  ;;  %v1520_v6 = vcombine.low %v1394_v46, %v1395_v58 }
 0x19a   :  { %v2010_v59 = vmax.f32 %v1988_v43, 0.0  ;;  %v1495_v60 = vrot.slane %v1481_v50, %v2553_v44  ;;  %v2005_v63 = vcombine.high %v1991_v48, %v1991_v48  ;;  %v2012_v18 = vmax.f32 %v1991_v48, 0.0 }
 0x19b   :  { %v2011_v61 = vmax.f32 %v2004_v52, 0.0  ;;  %v1995_v27 = vpop.f32.mrb[8].mxu0  ;;  %v1529_v42 = vrot.slane %v1519_v47, %v2553_v44  ;;  %v1536_v22 = vrot.slane %v1520_v6, %v2553_v44  ;;  %v625_v0 = vadd.f32 %v624_v14, %v623_v26 }
 0x19c   :  { %v1996_v1 = vadd.f32 %v1995_v27, %v1943_v32  ;;  %v1997_v2 = vpop.f32.mrb[9].mxu0  ;;  %v1479_v21 = vcombine.low %v1471_v55, %v1478_v49  ;;  %v1503_v38 = vcombine.low %v1488_v56, %v1495_v60  ;;  %v1517_v58 = vrot.slane %v1502_v51, %v2553_v44 }
 0x19d   :  { %v2020_v37 = vcombine.low %v2010_v59, %v2011_v61  ;;  %v1998_v3 = vpop.f32.mrb[10].mxu0  ;;  %v1551_v4 = vcombine.low %v1529_v42, %v1536_v22  ;;  %v2013_v7 = vmax.f32 %v2005_v63, 0.0  ;;  %v2026_v40 = vsel %vm2025_vm5, %v2012_v18, 0.0  ;;  %v637_v63 = vld [vmem:[%s2986_s7] sm:$0xff]  ;;  %v638_v18 = vld [vmem:[%s2986_s7 + $0x8] sm:$0xff] }
 0x19e   :  { %v2006_v8 = vcombine.high %v1996_v1, %v1996_v1  ;;  %v2014_v57 = vmax.f32 %v1996_v1, 0.0  ;;  %v1999_v10 = vpop.f32.mrb[11].mxu0  ;;  %v1510_v11 = vrot.slane %v1503_v38, %v2553_v44  ;;  %v633_v54 = vrot.slane %v2860_v17, 2  ;;  %v639_v38 = vld [vmem:[%s2986_s7 + $0x10] sm:$0xff] }
 0x19f   :  { %v2024_v13 = vsel %vm77_vm1, %v2020_v37, 0.0  ;;  %v1559_v32 = vrot.slane %v1551_v4, %v2553_v44  ;;  %v1611_v24 = vsel %vm77_vm1, %v1479_v21, 0.0  ;;  %v626_v25 = vrot.slane %v625_v0, 1  ;;  %v641_v4 = vld [vmem:[%s2986_s7 + $0x20] sm:$0xff]  ;;  %v644_v10 = vld [vmem:[%s2986_s7 + $0x38] sm:$0xff] }
 0x1a0   :  { %v2027_v26 = vadd.f32 %v2026_v40, %v2024_v13  ;;  %v2015_v14 = vmax.f32 %v2006_v8, 0.0  ;;  %v2021_v15 = vcombine.low %v2013_v7, %v2014_v57  ;;  %v1518_v23 = vcombine.low %v1510_v11, %v1517_v58  ;;  %v640_v58 = vld [vmem:[%s2986_s7 + $0x18] sm:$0xff]  ;;  %v642_v7 = vld [vmem:[%s2986_s7 + $0x28] sm:$0xff]  ;;  %v643_v57 = vld [vmem:[%s2986_s7 + $0x30] sm:$0xff] }
 0x1a1   :  { %v634_v28 = vadd.f32 %v633_v54, %v2860_v17  ;;  %v1567_v29 = vcombine.low %v1559_v32, %v1566_v5  ;;  %v1622_v35 = vsel %vm1612_vm6, %v1606_v45, 0.0  ;;  %v627_v44 = vadd.f32 %v626_v25, %v625_v0  ;;  %v2043_v13 = vld [vmem:[%s2986_s7 + $0x80] sm:$0xff]  ;;  %v2044_v40 = vld [vmem:[%s2986_s7 + $0x88] sm:$0xff]  ;;  %v2045_v32 = vld [vmem:[%s2986_s7 + $0x90] sm:$0xff] }
 0x1a2   :  { %v2028_v30 = vrot.slane %v2027_v26, 4  ;;  %v2034_v31 = vsel %vm77_vm1, %v2021_v15, 0.0  ;;  %v2035_v16 = vsel %vm2025_vm5, %v2015_v14, 0.0  ;;  %v1613_v19 = vsel %vm1612_vm6, %v1518_v23, 0.0  ;;  %v2047_v15 = vld [vmem:[%s2986_s7 + $0xa0] sm:$0xff]  ;;  %v2048_v23 = vld [vmem:[%s2986_s7 + $0xa8] sm:$0xff] }
 0x1a3   :  { %v2036_v33 = vadd.f32 %v2035_v16, %v2034_v31  ;;  %v635_v34 = vrot.slane %v634_v28, 1  ;;  %v1614_v62 = vadd.f32 %v1613_v19, %v1611_v24  ;;  %v1621_v17 = vsel %vm77_vm1, %v1567_v29, 0.0  ;;  %v2049_v25 = vld [vmem:[%s2986_s7 + $0xb0] sm:$0xff] }
 0x1a4   :  { %v2029_v36 = vadd.f32 %v2028_v30, %v2027_v26  ;;  %v1623_v12 = vadd.f32 %v1622_v35, %v1621_v17  ;;  %v2349_v0 = vpack.c.bf16 %v638_v18, %v637_v63  ;;  %v2352_v3 = vpack.c.bf16 %v640_v58, %v639_v38  ;;  %v2046_v26 = vld [vmem:[%s2986_s7 + $0x98] sm:$0xff] }
 0x1a5   :  { %v2037_v39 = vrot.slane %v2036_v33, 4  ;;  %v636_v53 = vadd.f32 %v635_v34, %v634_v28  ;;  %v1615_v41 = vrot.slane %v1614_v62, 4  ;;  %v2355_v8 = vpack.c.bf16 %v642_v7, %v641_v4  ;;  %v2197_v34 = vld [vmem:[%s2987_s8] ss:$0 sm:$0xff] }
 0x1a6   :  { %v2030_v5 = vrot.slane %v2029_v36, 2  ;;  %v1624_v46 = vrot.slane %v1623_v12, 4  ;;  %v2358_v11 = vpack.c.bf16 %v644_v10, %v643_v57  ;;  %v2361_v54 = vpack.c.bf16 %v2044_v40, %v2043_v13 }
 0x1a7   :  { %v2038_v43 = vadd.f32 %v2037_v39, %v2036_v33  ;;  %v1716_v47 = vsel %vm1640_vm7, %v636_v53, %v627_v44  ;;  %v1616_v49 = vadd.f32 %v1615_v41, %v1614_v62  ;;  %v2364_v14 = vpack.c.bf16 %v2046_v26, %v2045_v32 }
 0x1a8   :  { %v2031_v48 = vadd.f32 %v2030_v5, %v2029_v36  ;;  %v1625_v51 = vadd.f32 %v1624_v46, %v1623_v12  ;;  %v2367_v24 = vpack.c.bf16 %v2048_v23, %v2047_v15 }
 0x1a9   :  { %v2039_v50 = vrot.slane %v2038_v43, 2  ;;  %v1617_v52 = vrot.slane %v1616_v49, 2 }
 0x1aa   :  { %v2032_v45 = vrot.slane %v2031_v48, 1  ;;  %v1626_v56 = vrot.slane %v1625_v51, 2 }
 0x1ab   :  { %v2040_v55 = vadd.f32 %v2039_v50, %v2038_v43  ;;  %v1618_v6 = vadd.f32 %v1617_v52, %v1616_v49 }
 0x1ac   :  { %v1627_v60 = vadd.f32 %v1626_v56, %v1625_v51  ;;  %v2033_v42 = vadd.f32 %v2032_v45, %v2031_v48 }
 0x1ad   :  { %v2041_v59 = vrot.slane %v2040_v55, 1  ;;  %v1619_v61 = vrot.slane %v1618_v6, 1 }
 0x1ae   :  { %v1628_v27 = vrot.slane %v1627_v60, 1 }
 0x1af   :  { %v2042_v22 = vadd.f32 %v2041_v59, %v2040_v55  ;;  %v1620_v1 = vadd.f32 %v1619_v61, %v1618_v6 }
 0x1b0   :  { %v1629_v2 = vadd.f32 %v1628_v27, %v1627_v60 }
 0x1b1   :  { %v2053_v21 = vsel %vm1640_vm7, %v2042_v22, %v2033_v42 }
 0x1b2   :  { %v1641_v37 = vsel %vm1640_vm7, %v1629_v2, %v1620_v1 }
 0x1b3   :  { %2296 = vmatmul.mubr.msk.f32.vlgmr.msra.gmra.mrb[4].mxu1 %vm77_vm1, %v1641_v37 }
 0x1b4   :  { %2350 = vmatpush3.bf16.msra.mxu1 %v2349_v0  ;;  %2314 = vmatprep.mubr.msk.f32.mxu1 %vm2439_vm3, %v2440_v20 }
 0x1b5   :  { %2351 = vmatprep.subr.bf16.mxu1 %v2438_v9 }
 0x1b8   :  { %2353 = vmatpush3.bf16.msra.mxu1 %v2352_v3 }
 0x1b9   :  { %2354 = vmatprep.subr.bf16.mxu1 %v2438_v9 }
 0x1bc   :  { %2356 = vmatpush3.bf16.msra.mxu1 %v2355_v8 }
 0x1bd   :  { %2357 = vmatprep.subr.bf16.mxu1 %v2438_v9 }
 0x1c0   :  { %2359 = vmatpush3.bf16.msra.mxu1 %v2358_v11 }
 0x1c1   :  { %2360 = vmatprep.subr.bf16.mxu1 %v2438_v9 }
 0x1c3   :  { %2315 = vmatmul.mubr.msk.f32.vlgmr.msra.gmra.mrb[6].mxu1 %vm77_vm1, %v1716_v47 }
 0x1c4   :  { %2362 = vmatpush3.bf16.msra.mxu1 %v2361_v54  ;;  %2333 = vmatprep.mubr.msk.f32.mxu1 %vm2439_vm3, %v2440_v20  ;;  %v2050_v20 = vld [vmem:[%s2986_s7 + $0xb8] sm:$0xff]  ;;  %s2408_s7 = scalar_lea.vmem %s2143_s18, 32 }
 0x1c5   :  { %2363 = vmatprep.subr.bf16.mxu1 %v2438_v9  ;;  %v2370_v28 = vpack.c.bf16 %v2050_v20, %v2049_v25  ;;  %p2409_p0 = scmp.ne.s32.totalorder %s2143_s18, %s2408_s7  ;;  %p2414_p2 = scmp.lt.s32.totalorder %s2408_s7, %s2408_s7 }
 0x1c7   :  { %p2415_p3 = por %p2414_p2, %p2413_p1 }
 0x1c8   :  { %2365 = vmatpush3.bf16.msra.mxu1 %v2364_v14 }
 0x1c9   :  { %2366 = vmatprep.subr.bf16.mxu1 %v2438_v9  ;;  %p2416_p4 = pnand %p2415_p3, %p2409_p0 }
 0x1cc   :  { %2368 = vmatpush3.bf16.msra.mxu1 %v2367_v24 }
 0x1cd   :  { %2369 = vmatprep.subr.bf16.mxu1 %v2438_v9 }
 0x1d0   :  { %2371 = vmatpush3.bf16.msra.mxu1 %v2370_v28 }
 0x1d3   :  { %2334 = vmatmul.mubr.msk.f32.vlgmr.msra.gmra.mrb[8].mxu1 %vm77_vm1, %v2053_v21 }
 0x286   :  { %v1710_v29 = vpop.f32.mrb[4].mxu1 }
 0x287   :  { %v2297_v30 = vpop.f32.mrb[5].mxu1 }
 0x296   :  { %v1785_v31 = vpop.f32.mrb[6].mxu1 }
 0x297   :  { %v1786_v16 = vadd.f32 %v1785_v31, %v1710_v29  ;;  %v2316_v19 = vpop.f32.mrb[7].mxu1 }
 0x2a6   :  { %v2122_v33 = vpop.f32.mrb[8].mxu1 }
 0x2a7   :  { %v2126_v35 = vadd.f32 %v2122_v33, %v1786_v16  ;;  %v2335_v36 = vpop.f32.mrb[9].mxu1 }
 0x2a9   :  { %v2134_v62 = vadd.f32 %v2197_v34, %v2126_v35 }
 0x2ab   :  { %2135 = vst [vmem:[#allocation2] sm:$0x3] %v2134_v62 }
 0x2ac   :  { %2419 = shalt.err (!%p2416_p4)
}
 0x2ad   :  { %s2420_s5 = scalar_lea.hbm %s2988_s9, 32 }
 0x2ae   :  { %p2421_p5 = scmp.ne.s32.totalorder %s2988_s9, %s2420_s5  ;;  %p2424_p6 = scmp.lt.u32.totalorder %s2420_s5, %s2988_s9 }
 0x2b0   :  { %p2426_p7 = pnand %p2424_p6, %p2421_p5 }
 0x2b2   :  { %2429 = shalt.err (!%p2426_p7)
}
 0x2b3   :  { %2145 = dma.vmem_to_hbm [thread:$0]  %s2143_s18, 32, %s2988_s9, [#allocation3]  }
 0x2b4   :  { %2430 = dma.done.wait [#allocation3], 32  }
 0x2b5   :  { %2431 = vsyncadd [#allocation3], 4294967264 }
 0x2b6   :  { %2149 = vsyncpa [#allocation3], 1 }

</bundles_post_ra>
